<compile_context>
chip_gen: v7x
topology: tpu7x:2x2x1
jax: 0.10.0
libtpu: 0.0.40
codegen_flags: <defaults>
</compile_context>

<pallas_src>
import jax
import jax.numpy as jnp
from jax import lax
from jax.experimental import pallas as pl
from jax.experimental.pallas import tpu as pltpu

_PREC = lax.Precision.HIGHEST                 # f32-accurate MXU passes (matches reference)
_TILE_CAP = 128 * 1024                        # 131072 lanes -> ~16 MiB double-buffered VMEM
_CONTRACT_LAST = (((1,), (1,)), ((), ()))     # contract lhs dim 1 with rhs dim 1 (rhs^T)


def _round_up(n: int, m: int) -> int:
    return (n + m - 1) // m * m


def _sigmoid(z):
    # Exact sigmoid in single-EUP tanh form (one transcendental per vreg instead of
    # exp + approx-reciprocal; also removes the approx error that broke correctness).
    return 0.5 * jnp.tanh(0.5 * z) + 0.5


def _mlp_kernel(x_ref, w1_ref, b1_ref, w2_ref, b2_ref, w3_ref, b3_ref, o_ref):
    """One batch tile. x_ref: (b_tile, 8) natural layout; weights in PyTorch (out, in)."""
    x = x_ref[...]                                                        # (bt, 8)
    # Layer 1 as W1 @ x^T: contraction on x's last (feature) dim, so intermediates come
    # out lane-dense (features on sublanes, batch on lanes). The operand transpose is
    # handled on-chip by Mosaic — free filler under the x DMA.
    h = lax.dot_general(w1_ref[...], x, _CONTRACT_LAST,
                        precision=_PREC, preferred_element_type=jnp.float32)
    h = _sigmoid(h + b1_ref[...])                                         # (6, bt)
    h = _sigmoid(jnp.dot(w2_ref[...], h, precision=_PREC,
                         preferred_element_type=jnp.float32) + b2_ref[...])   # (4, bt)
    h = _sigmoid(jnp.dot(w3_ref[...], h, precision=_PREC,
                         preferred_element_type=jnp.float32) + b3_ref[...])   # (1, bt)
    o_ref[...] = h.astype(o_ref.dtype)                                    # lane-dense row


def _pick_tile(B: int) -> int:
    if B <= 128:
        return B                          # single full-array block (full-dim exemption)
    Bp = _round_up(B, 128)
    # >=2 tiles whenever possible (v7x megacore + DMA/compute overlap), as large as the
    # VMEM budget allows to amortize the ~0.35 us per-grid-step overhead.
    return min(_TILE_CAP, _round_up(pl.cdiv(Bp, 2), 128))


def mlp_forward(x, params, *, b_tile=None):
    """x: (B, 8) float32 in natural (batch, feature) layout -> (B, 1) float32.

    No wrapper-side transpose or pad of x: the kernel reads (b_tile, 8) blocks directly
    and the grid's last tile is allowed to be ragged.
    """
    B, F = x.shape
    w1, b1 = params["w1"], params["b1"]
    w2, b2 = params["w2"], params["b2"]
    w3, b3 = params["w3"], params["b3"]

    if b_tile is None:
        b_tile = _pick_tile(B)
    if b_tile < B:
        b_tile = _round_up(b_tile, 128)   # lane alignment for the (1, b_tile) output block
    if b_tile >= B:
        b_tile = B                        # single block == full array (always legal)

    grid = (pl.cdiv(B, b_tile),)          # last tile may be ragged; OOB rows/stores masked

    def resident(a):                      # full block + constant index map -> VMEM-resident
        return pl.BlockSpec(a.shape, lambda i: (0, 0))

    y_row = pl.pallas_call(
        _mlp_kernel,
        out_shape=jax.ShapeDtypeStruct((1, B), jnp.float32),
        grid=grid,
        in_specs=[
            pl.BlockSpec((b_tile, F), lambda i: (i, 0)),   # x tile (double-buffered)
            resident(w1), resident(b1),
            resident(w2), resident(b2),
            resident(w3), resident(b3),
        ],
        out_specs=pl.BlockSpec((1, b_tile), lambda i: (0, i)),   # lane-dense output row
        compiler_params=pltpu.CompilerParams(
            dimension_semantics=("parallel",),        # shard batch tiles across TCs (v7x)
            vmem_limit_bytes=32 * 1024 * 1024,        # v5e default is 16 MiB; cap tile ~16 MiB
        ),
    )(x, w1, b1, w2, b2, w3, b3)

    # (1, B) -> (B, 1): tiny relayout of the single output feature (4 B/element), while the
    # 8-feature x is never transposed or padded on the XLA side.
    return y_row.T


def init_params(key):
    """U(-1/sqrt(fan_in), +1/sqrt(fan_in)) init, mirroring torch.nn.Linear.

    Weights in PyTorch layout (out_features, in_features); biases as (out_features, 1)
    so they broadcast along the lane/batch axis in the kernel.
    """
    dims = [(8, 6), (6, 4), (4, 1)]
    params = {}
    for i, (fan_in, fan_out) in enumerate(dims, start=1):
        key, kw, kb = jax.random.split(key, 3)
        bound = 1.0 / jnp.sqrt(float(fan_in))
        params[f"w{i}"] = jax.random.uniform(
            kw, (fan_out, fan_in), jnp.float32, minval=-bound, maxval=bound)
        params[f"b{i}"] = jax.random.uniform(
            kb, (fan_out, 1), jnp.float32, minval=-bound, maxval=bound)
    return params


def mlp_reference(x, params):
    h = x
    for i in (1, 2, 3):
        h = jax.nn.sigmoid(
            jnp.dot(h, params[f"w{i}"].T, precision=_PREC) + params[f"b{i}"].T)
    return h


if __name__ == "__main__":
    key = jax.random.PRNGKey(0)
    key, kx, kx2 = jax.random.split(key, 3)
    params = init_params(key)

    # Small case matching the PyTorch module's typical usage (single full block).
    B = 8
    x = jax.random.normal(kx, (B, 8), jnp.float32)
    y = jax.block_until_ready(mlp_forward(x, params))
    y_ref = mlp_reference(x, params)
    assert y.shape == (B, 1)
    assert jnp.allclose(y, y_ref, atol=1e-4, rtol=1e-4), "mismatch vs JAX reference"

    # Multi-tile, non-multiple-of-128 batch: exercises the batch grid (2 tiles of 128),
    # the ragged last tile and the double-buffered pipeline — with no pad or transpose of x.
    B2 = 200
    x2 = jax.random.normal(kx2, (B2, 8), jnp.float32)
    y2 = jax.block_until_ready(mlp_forward(x2, params))
    y2_ref = mlp_reference(x2, params)
    assert y2.shape == (B2, 1)
    assert jnp.allclose(y2, y2_ref, atol=1e-4, rtol=1e-4), "mismatch vs JAX reference (B=200)"

    print("KERNEL_OK")
</pallas_src>

<mosaic_0001>
module attributes {stable_mosaic.version = 11 : i64} {
  func.func @_mlp_kernel(%arg0: i32, %arg1: memref<8x8xf32, #tpu.memory_space<vmem>>, %arg2: memref<6x8xf32, #tpu.memory_space<vmem>>, %arg3: memref<6x1xf32, #tpu.memory_space<vmem>>, %arg4: memref<4x6xf32, #tpu.memory_space<vmem>>, %arg5: memref<4x1xf32, #tpu.memory_space<vmem>>, %arg6: memref<1x4xf32, #tpu.memory_space<vmem>>, %arg7: memref<1x1xf32, #tpu.memory_space<vmem>>, %arg8: memref<1x8xf32, #tpu.memory_space<vmem>>) attributes {dimension_semantics = [#tpu.dimension_semantics<parallel>], iteration_bounds = array<i64: 1>, scalar_prefetch = 0 : i64, scratch_operands = 0 : i64, tpu.core_type = #tpu.core_type<tc>, window_params = [{transform_indices = @transform_0, window_bounds = array<i64: 8, 8>}, {pipeline_mode = #tpu.pipeline_mode<synchronous>, transform_indices = @transform_1, window_bounds = array<i64: 6, 8>}, {pipeline_mode = #tpu.pipeline_mode<synchronous>, transform_indices = @transform_2, window_bounds = array<i64: 6, 1>}, {pipeline_mode = #tpu.pipeline_mode<synchronous>, transform_indices = @transform_3, window_bounds = array<i64: 4, 6>}, {pipeline_mode = #tpu.pipeline_mode<synchronous>, transform_indices = @transform_4, window_bounds = array<i64: 4, 1>}, {pipeline_mode = #tpu.pipeline_mode<synchronous>, transform_indices = @transform_5, window_bounds = array<i64: 1, 4>}, {pipeline_mode = #tpu.pipeline_mode<synchronous>, transform_indices = @transform_6, window_bounds = array<i64: 1, 1>}, {transform_indices = @transform_7, window_bounds = array<i64: 1, 8>}]} {
    %c0 = arith.constant 0 : index
    %c0_0 = arith.constant 0 : index
    %0 = vector.load %arg1[%c0, %c0_0] : memref<8x8xf32, #tpu.memory_space<vmem>>, vector<8x8xf32>
    %c0_1 = arith.constant 0 : index
    %c0_2 = arith.constant 0 : index
    %1 = vector.load %arg2[%c0_1, %c0_2] : memref<6x8xf32, #tpu.memory_space<vmem>>, vector<6x8xf32>
    %cst = arith.constant dense<0.000000e+00> : vector<6x8xf32>
    %2 = tpu.matmul %1, %0, %cst {dimension_numbers = #tpu.dot_dimension_numbers<[1], [1], [0], [0], [0, 0, 1, 0], [], []>, precision = #tpu.contract_precision<fp32>} : vector<6x8xf32>, vector<8x8xf32>, vector<6x8xf32> -> vector<6x8xf32>
    %c0_3 = arith.constant 0 : index
    %c0_4 = arith.constant 0 : index
    %3 = vector.load %arg3[%c0_3, %c0_4] : memref<6x1xf32, #tpu.memory_space<vmem>>, vector<6x1xf32>
    %4 = vector.broadcast %3 : vector<6x1xf32> to vector<6x8xf32>
    %5 = arith.addf %2, %4 : vector<6x8xf32>
    %cst_5 = arith.constant 5.000000e-01 : f32
    %6 = vector.broadcast %cst_5 : f32 to vector<6x8xf32>
    %7 = arith.mulf %6, %5 : vector<6x8xf32>
    %8 = math.tanh %7 : vector<6x8xf32>
    %cst_6 = arith.constant 5.000000e-01 : f32
    %9 = vector.broadcast %cst_6 : f32 to vector<6x8xf32>
    %10 = arith.mulf %9, %8 : vector<6x8xf32>
    %cst_7 = arith.constant 5.000000e-01 : f32
    %11 = vector.broadcast %cst_7 : f32 to vector<6x8xf32>
    %12 = arith.addf %10, %11 : vector<6x8xf32>
    %c0_8 = arith.constant 0 : index
    %c0_9 = arith.constant 0 : index
    %13 = vector.load %arg4[%c0_8, %c0_9] : memref<4x6xf32, #tpu.memory_space<vmem>>, vector<4x6xf32>
    %cst_10 = arith.constant dense<0.000000e+00> : vector<4x8xf32>
    %14 = tpu.matmul %13, %12, %cst_10 {dimension_numbers = #tpu.dot_dimension_numbers<[1], [0], [0], [1], [0, 0, 1, 1], [], []>, precision = #tpu.contract_precision<fp32>} : vector<4x6xf32>, vector<6x8xf32>, vector<4x8xf32> -> vector<4x8xf32>
    %c0_11 = arith.constant 0 : index
    %c0_12 = arith.constant 0 : index
    %15 = vector.load %arg5[%c0_11, %c0_12] : memref<4x1xf32, #tpu.memory_space<vmem>>, vector<4x1xf32>
    %16 = vector.broadcast %15 : vector<4x1xf32> to vector<4x8xf32>
    %17 = arith.addf %14, %16 : vector<4x8xf32>
    %cst_13 = arith.constant 5.000000e-01 : f32
    %18 = vector.broadcast %cst_13 : f32 to vector<4x8xf32>
    %19 = arith.mulf %18, %17 : vector<4x8xf32>
    %20 = math.tanh %19 : vector<4x8xf32>
    %cst_14 = arith.constant 5.000000e-01 : f32
    %21 = vector.broadcast %cst_14 : f32 to vector<4x8xf32>
    %22 = arith.mulf %21, %20 : vector<4x8xf32>
    %cst_15 = arith.constant 5.000000e-01 : f32
    %23 = vector.broadcast %cst_15 : f32 to vector<4x8xf32>
    %24 = arith.addf %22, %23 : vector<4x8xf32>
    %c0_16 = arith.constant 0 : index
    %c0_17 = arith.constant 0 : index
    %25 = vector.load %arg6[%c0_16, %c0_17] : memref<1x4xf32, #tpu.memory_space<vmem>>, vector<1x4xf32>
    %cst_18 = arith.constant dense<0.000000e+00> : vector<1x8xf32>
    %26 = tpu.matmul %25, %24, %cst_18 {dimension_numbers = #tpu.dot_dimension_numbers<[1], [0], [0], [1], [0, 0, 1, 1], [], []>, precision = #tpu.contract_precision<fp32>} : vector<1x4xf32>, vector<4x8xf32>, vector<1x8xf32> -> vector<1x8xf32>
    %c0_19 = arith.constant 0 : index
    %c0_20 = arith.constant 0 : index
    %27 = vector.load %arg7[%c0_19, %c0_20] : memref<1x1xf32, #tpu.memory_space<vmem>>, vector<1x1xf32>
    %28 = vector.broadcast %27 : vector<1x1xf32> to vector<1x8xf32>
    %29 = arith.addf %26, %28 : vector<1x8xf32>
    %cst_21 = arith.constant 5.000000e-01 : f32
    %30 = vector.broadcast %cst_21 : f32 to vector<1x8xf32>
    %31 = arith.mulf %30, %29 : vector<1x8xf32>
    %32 = math.tanh %31 : vector<1x8xf32>
    %cst_22 = arith.constant 5.000000e-01 : f32
    %33 = vector.broadcast %cst_22 : f32 to vector<1x8xf32>
    %34 = arith.mulf %33, %32 : vector<1x8xf32>
    %cst_23 = arith.constant 5.000000e-01 : f32
    %35 = vector.broadcast %cst_23 : f32 to vector<1x8xf32>
    %36 = arith.addf %34, %35 : vector<1x8xf32>
    %c0_24 = arith.constant 0 : index
    %c0_25 = arith.constant 0 : index
    %37 = vector.load %arg8[%c0_24, %c0_25] : memref<1x8xf32, #tpu.memory_space<vmem>>, vector<1x8xf32>
    tpu.vector_store %arg8[%c0_24, %c0_25], %36 {strides = array<i32>} : memref<1x8xf32, #tpu.memory_space<vmem>>, vector<1x8xf32>,
    return
  }
  func.func @transform_0(%arg0: i32) -> (i32, i32) {
    %c0_i32 = arith.constant 0 : i32
    %c0_i32_0 = arith.constant 0 : i32
    return %arg0, %c0_i32 : i32, i32
  }
  func.func @transform_1(%arg0: i32) -> (i32, i32) {
    %c0_i32 = arith.constant 0 : i32
    %c0_i32_0 = arith.constant 0 : i32
    %c0_i32_1 = arith.constant 0 : i32
    return %c0_i32, %c0_i32_0 : i32, i32
  }
  func.func @transform_2(%arg0: i32) -> (i32, i32) {
    %c0_i32 = arith.constant 0 : i32
    %c0_i32_0 = arith.constant 0 : i32
    %c0_i32_1 = arith.constant 0 : i32
    return %c0_i32, %c0_i32_0 : i32, i32
  }
  func.func @transform_3(%arg0: i32) -> (i32, i32) {
    %c0_i32 = arith.constant 0 : i32
    %c0_i32_0 = arith.constant 0 : i32
    %c0_i32_1 = arith.constant 0 : i32
    return %c0_i32, %c0_i32_0 : i32, i32
  }
  func.func @transform_4(%arg0: i32) -> (i32, i32) {
    %c0_i32 = arith.constant 0 : i32
    %c0_i32_0 = arith.constant 0 : i32
    %c0_i32_1 = arith.constant 0 : i32
    return %c0_i32, %c0_i32_0 : i32, i32
  }
  func.func @transform_5(%arg0: i32) -> (i32, i32) {
    %c0_i32 = arith.constant 0 : i32
    %c0_i32_0 = arith.constant 0 : i32
    %c0_i32_1 = arith.constant 0 : i32
    return %c0_i32, %c0_i32_0 : i32, i32
  }
  func.func @transform_6(%arg0: i32) -> (i32, i32) {
    %c0_i32 = arith.constant 0 : i32
    %c0_i32_0 = arith.constant 0 : i32
    %c0_i32_1 = arith.constant 0 : i32
    return %c0_i32, %c0_i32_0 : i32, i32
  }
  func.func @transform_7(%arg0: i32) -> (i32, i32) {
    %c0_i32 = arith.constant 0 : i32
    %c0_i32_0 = arith.constant 0 : i32
    return %c0_i32, %arg0 : i32, i32
  }
}

</mosaic_0001>

<bundles_post_ra>
// kernel: tpu_custom_call.1
= control target key start
LH: loop header
LB: loop body
LE: loop exit
PB: predicated region body
PF: predicated region fallthrough
CT: control target
= control target key end

     0   :  { %s1769_s0 = inlined_call_operand.vmem [shape: f32[8,8], index: 0, kind: input, shape index: {}]   ;;  %s1770_s1 = inlined_call_operand.vmem [shape: f32[6,8], index: 1, kind: input, shape index: {}]   ;;  %s1771_s2 = inlined_call_operand.vmem [shape: f32[6,1], index: 2, kind: input, shape index: {}]   ;;  %s1772_s3 = inlined_call_operand.vmem [shape: f32[4,6], index: 3, kind: input, shape index: {}]   ;;  %s1773_s4 = inlined_call_operand.vmem [shape: f32[4,1], index: 4, kind: input, shape index: {}]   ;;  %s1774_s5 = inlined_call_operand.vmem [shape: f32[1,4], index: 5, kind: input, shape index: {}]   ;;  %s1775_s6 = inlined_call_operand.<no memory space> [shape: f32[1,1], index: 6, kind: input, shape index: {}]   ;;  %s1776_s7 = inlined_call_operand.hbm [shape: f32[1,8], index: 7, kind: output, shape index: {}]  }
   0x1   :  { %v12_v0 = vstv %s1775_s6 }
   0x2   :  { %13 = vst [vmem:[#allocation2] sm:$0x1] %v12_v0 }
   0x3   :  { %v29_v1 = vld [vmem:[%s1769_s0] sm:$0xff]  ;;  %vm37_vm0 = vcmask 64512   ;;  %v1638_v3 = vmov 0.0   ;;  %vm1639_vm1 = vmmov 0   ;;  %v1640_v9 = vmov 0  }
   0x4   :  { %v30_v2 = vld [vmem:[%s1770_s1] sm:$0x3f]  ;;  %1480 = vmatprep.subr.mxu0 %v1638_v3  ;;  %v42_v4 = vsel %vm37_vm0, %v29_v1, 0  ;;  %1482 = vmatprep.mubr.msk.f32.mxu0 %vm1639_vm1, %v1638_v3 }
   0x5   :  { %v39_v5 = vsel %vm37_vm0, %v30_v2, 0  ;;  %v31_v6 = vld [vmem:[%s1771_s2] sm:$0x3f]  ;;  %v45_v7 = vand.u32 4294901760, %v42_v4  ;;  %1606 = vset.pattern.permute.xlu0 %v1640_v9  ;;  %1525 = vmatprep.subr.mxu1 %v1638_v3 }
   0x6   :  { %v110_v8 = vand.u32 4294901760, %v39_v5 }
   0x7   :  { %14 = vsyncpa [#allocation4], 0  ;;  %34 = vperm.xlu0 %1606, %v31_v6   ;;  %1527 = vmatprep.mubr.msk.f32.mxu1 %vm1639_vm1, %v1638_v3  ;;  %v122_v10 = vsub.f32 %v42_v4, %v45_v7  ;;  %v495_v12 = vld [vmem:[%s1773_s4] sm:$0xf]  ;;  %vm501_vm2 = vcmask 48128   ;;  %vm505_vm3 = vcmask 1045504   ;;  %v966_v1 = vlaneseq }
   0x8   :  { %1481 = vmatpush3.xpose.msra.mxu0 %v45_v7  ;;  %v111_v11 = vsub.f32 %v39_v5, %v110_v8  ;;  %1607 = vset.pattern.permute.xlu1 %v1640_v9  ;;  %v494_v19 = vld [vmem:[%s1772_s3] sm:$0xf]  ;;  %vm970_vm4 = vcmask 31744   ;;  %vm974_vm5 = vcmask 1043456   ;;  %vm1428_vm6 = vcmask 57344  }
   0x9   :  { %1485 = vmatprep.subr.mxu0 %v1638_v3  ;;  %v123_v14 = vand.u32 4294901760, %v122_v10  ;;  %v503_v24 = vsel %vm501_vm2, %v494_v19, 0  ;;  %v960_v40 = vld [vmem:[#allocation2] sm:$0x1]  ;;  %v967_v2 = vshrl.u32 %v966_v1, 7 }
   0xa   :  { %v112_v13 = vand.u32 4294901760, %v111_v11  ;;  %v575_v26 = vand.u32 4294901760, %v503_v24  ;;  %963 = vperm.xlu1 %1607, %v960_v40   ;;  %v959_v43 = vld [vmem:[%s1774_s5] sm:$0x1]  ;;  %s1641_s5 = smov [#allocation3]  }
   0xb   :  { %498 = vperm.xlu0 %1606, %v495_v12   ;;  %v124_v16 = vsub.f32 %v122_v10, %v123_v14  ;;  %v972_v49 = vsel %vm970_vm4, %v959_v43, 0  ;;  %v968_v4 = vsub.s32 0, %v967_v2  ;;  %s1436_s9 = sshll.u32 %s1641_s5, 4  ;;  %s1437_s9 = int_to_ptr.vmem [resolvable:$true] %s1436_s9 }
   0xc   :  { %v113_v15 = vsub.f32 %v111_v11, %v112_v13  ;;  %v576_v27 = vsub.f32 %v503_v24, %v575_v26  ;;  %v1044_v51 = vand.u32 4294901760, %v972_v49  ;;  %s1614_s10 = scalar_lea.vmem %s1437_s9, 16  ;;  %s1618_s11 = scalar_lea.vmem %s1437_s9, 32 }
   0xd   :  { %v125_v18 = vand.u32 4294901760, %v124_v16  ;;  %p1615_p0 = scmp.ne.s32.totalorder %s1437_s9, %s1614_s10  ;;  %p1619_p1 = scmp.lt.s32.totalorder %s1437_s9, %s1437_s9 }
   0xe   :  { %v114_v17 = vand.u32 4294901760, %v113_v15  ;;  %v577_v28 = vand.u32 4294901760, %v576_v27  ;;  %v1045_v52 = vsub.f32 %v972_v49, %v1044_v51  ;;  %p1620_p2 = scmp.lt.s32.totalorder %s1618_s11, %s1614_s10 }
  0x10   :  { %1483 = vmatmul.mubr.f32.vlgmr.msra.gmra.mrb[0].mxu0 %v114_v17  ;;  %v578_v31 = vsub.f32 %v576_v27, %v577_v28  ;;  %v1046_v53 = vand.u32 4294901760, %v1045_v52  ;;  %p1621_p3 = por %p1620_p2, %p1619_p1 }
  0x11   :  { %1486 = vmatpush3.xpose.msra.mxu0 %v125_v18  ;;  %1487 = vmatprep.mubr.msk.f32.mxu0 %vm1639_vm1, %v1638_v3 }
  0x12   :  { %1490 = vmatprep.subr.mxu0 %v1638_v3  ;;  %v579_v34 = vand.u32 4294901760, %v578_v31  ;;  %v1047_v56 = vsub.f32 %v1045_v52, %v1046_v53  ;;  %p1622_p4 = pnand %p1621_p3, %p1615_p0 }
  0x14   :  { %v1048_v59 = vand.u32 4294901760, %v1047_v56 }
  0x18   :  { %1488 = vmatmul.mubr.f32.vlgmr.msra.gmra.mrb[0].mxu0 %v110_v8 }
  0x19   :  { %1491 = vmatpush3.xpose.msra.mxu0 %v122_v10  ;;  %1492 = vmatprep.mubr.msk.f32.mxu0 %vm1639_vm1, %v1638_v3 }
  0x1a   :  { %1495 = vmatprep.subr.mxu0 %v1638_v3 }
  0x20   :  { %1493 = vmatmul.mubr.f32.vlgmr.msra.gmra.mrb[0].mxu0 %v111_v11 }
  0x21   :  { %1496 = vmatpush3.xpose.msra.mxu0 %v45_v7  ;;  %1497 = vmatprep.mubr.msk.f32.mxu0 %vm1639_vm1, %v1638_v3 }
  0x22   :  { %1500 = vmatprep.subr.mxu0 %v1638_v3 }
  0x28   :  { %1498 = vmatmul.mubr.f32.vlgmr.msra.gmra.mrb[0].mxu0 %v112_v13 }
  0x29   :  { %1501 = vmatpush3.xpose.msra.mxu0 %v123_v14  ;;  %1502 = vmatprep.mubr.msk.f32.mxu0 %vm1639_vm1, %v1638_v3 }
  0x2a   :  { %1505 = vmatprep.subr.mxu0 %v1638_v3 }
  0x30   :  { %1503 = vmatmul.mubr.f32.vlgmr.msra.gmra.mrb[0].mxu0 %v110_v8 }
  0x31   :  { %1506 = vmatpush3.xpose.msra.mxu0 %v45_v7  ;;  %1507 = vmatprep.mubr.msk.f32.mxu0 %vm1639_vm1, %v1638_v3 }
  0x32   :  { %1510 = vmatprep.subr.mxu0 %v1638_v3 }
  0x38   :  { %1508 = vmatmul.mubr.f32.vlgmr.msra.gmra.mrb[0].mxu0 %v110_v8 }
  0x39   :  { %1512 = vmatprep.mubr.msk.f32.mxu0 %vm1639_vm1, %v1638_v3 }
  0x86   :  { %v35_v20 = vpop.permute.xlu0 %34 }
  0x89   :  { %v964_v5 = vpop.permute.xlu1 %963 }
  0x8a   :  { %v499_v41 = vpop.permute.xlu0 %498  ;;  %v969_v6 = vrot.slane %v964_v5, %v968_v4 }
 0x10b   :  { %v486_v21 = vpop.f32.mrb[0].mxu0 }
 0x10c   :  { %v1570_v22 = vadd.f32 %v486_v21, %v35_v20  ;;  %v1509_v23 = vpop.f32.mrb[1].mxu0 }
 0x10e   :  { %v490_v25 = vmul.f32 0.5, %v1570_v22 }
 0x110   :  { %1608 = vtanh.f32 %v490_v25 }
 0x11a   :  { %v1609_v29 = vpop.eup %1608 }
 0x11b   :  { %v492_v30 = vmul.f32 0.5, %v1609_v29 }
 0x11d   :  { %v493_v32 = vadd.f32 0.5, %v492_v30 }
 0x11f   :  { %v507_v33 = vsel %vm505_vm3, %v493_v32, 0 }
 0x120   :  { %v510_v35 = vand.u32 4294901760, %v507_v33 }
 0x122   :  { %1511 = vmatpush3.msra.mxu0 %v510_v35  ;;  %1526 = vmatpush3.msra.mxu1 %v510_v35  ;;  %v587_v36 = vsub.f32 %v507_v33, %v510_v35 }
 0x123   :  { %1513 = vmatmul.mubr.f32.vlgmr.msra.gmra.mrb[2].mxu0 %v579_v34  ;;  %1528 = vmatmul.mubr.f32.vlgmr.msra.gmra.mrb[0].mxu1 %v577_v28 }
 0x124   :  { %1530 = vmatprep.subr.mxu1 %v1638_v3  ;;  %v588_v37 = vand.u32 4294901760, %v587_v36  ;;  %1515 = vmatprep.subr.mxu0 %v1638_v3 }
 0x125   :  { %1517 = vmatprep.mubr.msk.f32.mxu0 %vm1639_vm1, %v1638_v3  ;;  %1532 = vmatprep.mubr.msk.f32.mxu1 %vm1639_vm1, %v1638_v3 }
 0x126   :  { %1531 = vmatpush3.msra.mxu1 %v588_v37  ;;  %v589_v38 = vsub.f32 %v587_v36, %v588_v37 }
 0x127   :  { %1535 = vmatprep.subr.mxu1 %v1638_v3 }
 0x128   :  { %v590_v39 = vand.u32 4294901760, %v589_v38 }
 0x12a   :  { %1516 = vmatpush3.msra.mxu0 %v590_v39 }
 0x12b   :  { %1518 = vmatmul.mubr.f32.vlgmr.msra.gmra.mrb[2].mxu0 %v575_v26  ;;  %1520 = vmatprep.subr.mxu0 %v1638_v3 }
 0x12c   :  { %1533 = vmatmul.mubr.f32.vlgmr.msra.gmra.mrb[0].mxu1 %v575_v26  ;;  %1521 = vmatpush3.msra.mxu0 %v587_v36 }
 0x12d   :  { %1536 = vmatpush3.msra.mxu1 %v510_v35  ;;  %1522 = vmatprep.mubr.msk.f32.mxu0 %vm1639_vm1, %v1638_v3 }
 0x12e   :  { %1537 = vmatprep.mubr.msk.f32.mxu1 %vm1639_vm1, %v1638_v3  ;;  %1540 = vmatprep.subr.mxu1 %v1638_v3 }
 0x133   :  { %1523 = vmatmul.mubr.f32.vlgmr.msra.gmra.mrb[2].mxu0 %v576_v27 }
 0x134   :  { %1538 = vmatmul.mubr.f32.vlgmr.msra.gmra.mrb[0].mxu1 %v575_v26 }
 0x135   :  { %1542 = vmatprep.mubr.msk.f32.mxu1 %vm1639_vm1, %v1638_v3 }
 0x206   :  { %v731_v42 = vpop.f32.mrb[2].mxu0 }
 0x207   :  { %v1571_v44 = vadd.f32 %v731_v42, %v499_v41  ;;  %v951_v45 = vpop.f32.mrb[0].mxu1  ;;  %v1524_v46 = vpop.f32.mrb[3].mxu0 }
 0x208   :  { %v1539_v47 = vpop.f32.mrb[1].mxu1 }
 0x209   :  { %v1572_v48 = vadd.f32 %v1571_v44, %v951_v45 }
 0x20b   :  { %v955_v50 = vmul.f32 0.5, %v1572_v48 }
 0x20d   :  { %1610 = vtanh.f32 %v955_v50 }
 0x217   :  { %v1611_v54 = vpop.eup %1610 }
 0x218   :  { %v957_v55 = vmul.f32 0.5, %v1611_v54 }
 0x21a   :  { %v958_v57 = vadd.f32 0.5, %v957_v55 }
 0x21c   :  { %v976_v58 = vsel %vm974_vm5, %v958_v57, 0 }
 0x21d   :  { %v979_v60 = vand.u32 4294901760, %v976_v58 }
 0x21f   :  { %1541 = vmatpush3.msra.mxu1 %v979_v60  ;;  %v1056_v61 = vsub.f32 %v976_v58, %v979_v60 }
 0x220   :  { %1543 = vmatmul.mubr.f32.vlgmr.msra.gmra.mrb[2].mxu1 %v1048_v59  ;;  %1545 = vmatprep.subr.mxu1 %v1638_v3 }
 0x221   :  { %v1057_v62 = vand.u32 4294901760, %v1056_v61  ;;  %1547 = vmatprep.mubr.msk.f32.mxu1 %vm1639_vm1, %v1638_v3 }
 0x223   :  { %v1058_v63 = vsub.f32 %v1056_v61, %v1057_v62 }
 0x225   :  { %v1059_v0 = vand.u32 4294901760, %v1058_v63 }
 0x227   :  { %1546 = vmatpush3.msra.mxu1 %v1059_v0 }
 0x228   :  { %1548 = vmatmul.mubr.f32.vlgmr.msra.gmra.mrb[2].mxu1 %v1044_v51  ;;  %1550 = vmatprep.subr.mxu1 %v1638_v3 }
 0x229   :  { %1551 = vmatpush3.msra.mxu1 %v1056_v61  ;;  %1552 = vmatprep.mubr.msk.f32.mxu1 %vm1639_vm1, %v1638_v3 }
 0x22a   :  { %1555 = vmatprep.subr.mxu1 %v1638_v3 }
 0x230   :  { %1553 = vmatmul.mubr.f32.vlgmr.msra.gmra.mrb[2].mxu1 %v1045_v52 }
 0x231   :  { %1556 = vmatpush3.msra.mxu1 %v979_v60  ;;  %1557 = vmatprep.mubr.msk.f32.mxu1 %vm1639_vm1, %v1638_v3 }
 0x232   :  { %1560 = vmatprep.subr.mxu1 %v1638_v3 }
 0x238   :  { %1558 = vmatmul.mubr.f32.vlgmr.msra.gmra.mrb[2].mxu1 %v1046_v53 }
 0x239   :  { %1561 = vmatpush3.msra.mxu1 %v1057_v62  ;;  %1562 = vmatprep.mubr.msk.f32.mxu1 %vm1639_vm1, %v1638_v3 }
 0x23a   :  { %1565 = vmatprep.subr.mxu1 %v1638_v3 }
 0x240   :  { %1563 = vmatmul.mubr.f32.vlgmr.msra.gmra.mrb[2].mxu1 %v1044_v51 }
 0x241   :  { %1566 = vmatpush3.msra.mxu1 %v979_v60  ;;  %1567 = vmatprep.mubr.msk.f32.mxu1 %vm1639_vm1, %v1638_v3 }
 0x248   :  { %1568 = vmatmul.mubr.f32.vlgmr.msra.gmra.mrb[2].mxu1 %v1044_v51 }
 0x31b   :  { %v1420_v7 = vpop.f32.mrb[2].mxu1 }
 0x31c   :  { %v1573_v8 = vadd.f32 %v1420_v7, %v969_v6  ;;  %v1569_v9 = vpop.f32.mrb[3].mxu1 }
 0x31e   :  { %v1424_v10 = vmul.f32 0.5, %v1573_v8 }
 0x320   :  { %1612 = vtanh.f32 %v1424_v10 }
 0x32a   :  { %v1613_v11 = vpop.eup %1612 }
 0x32b   :  { %v1426_v12 = vmul.f32 0.5, %v1613_v11 }
 0x32d   :  { %v1427_v13 = vadd.f32 0.5, %v1426_v12 }
 0x32f   :  { %1429 = vst.msk [vmem:[#allocation3] sm:$0x1] %vm1428_vm6, %v1427_v13 }
 0x330   :  { %1625 = shalt.err (!%p1622_p4)
}
 0x331   :  { %s1626_s14 = scalar_lea.hbm %s1776_s7, 16 }
 0x332   :  { %p1627_p5 = scmp.ne.s32.totalorder %s1776_s7, %s1626_s14  ;;  %p1630_p6 = scmp.lt.u32.totalorder %s1626_s14, %s1776_s7 }
 0x334   :  { %p1632_p7 = pnand %p1630_p6, %p1627_p5 }
 0x336   :  { %1635 = shalt.err (!%p1632_p7)
}
 0x337   :  { %1439 = dma.vmem_to_hbm [thread:$0]  %s1437_s9, 16, %s1776_s7, [#allocation4]  }
 0x338   :  { %1636 = dma.done.wait [#allocation4], 16  }
 0x339   :  { %1637 = vsyncadd [#allocation4], 4294967280 }
 0x33a   :  { %1443 = vsyncpa [#allocation4], 1 }

</bundles_post_ra>
